<compile_context>
chip_gen: v6e
topology: v6e:2x2x1
jax: 0.10.0
libtpu: 0.0.40
codegen_flags: <defaults>
</compile_context>

<pallas_src>
import functools

import jax
import jax.numpy as jnp
from jax.experimental import pallas as pl
from jax.experimental.pallas import tpu as pltpu

_CHUNK = 256  # in-kernel batch sub-tile (bounds vreg live ranges)


def _round_up(n, m):
    return ((n + m - 1) // m) * m


def _cdiv(n, m):
    return (n + m - 1) // m


def _mlp_actor_kernel(act_limit_ref,          # scalar prefetch (SMEM): (1,) f32
                      x_ref,                  # (tb, in_dim) f32
                      w1_ref, b1_ref,         # (H1, in), (1, H1) f32
                      w2_ref, b2_ref,         # (H2, H1), (1, H2) f32
                      w3_ref, b3_ref,         # (OUT, H2), (1, OUT) f32
                      o_ref,                  # (tb, OUT)
                      *, chunk, n_chunks):
    scale = act_limit_ref[0]
    # Contract the last dims of both operands: X @ W^T with PyTorch (out, in)
    # weight layout — natively supported MXU pattern (no transposes).
    dn = (((1,), (1,)), ((), ()))

    def compute(xb):
        h = jax.lax.dot_general(xb, w1_ref[...], dn,
                                preferred_element_type=jnp.float32) + b1_ref[...]
        h = jnp.maximum(h, 0.0)
        h = jax.lax.dot_general(h, w2_ref[...], dn,
                                preferred_element_type=jnp.float32) + b2_ref[...]
        h = jnp.maximum(h, 0.0)
        y = jax.lax.dot_general(h, w3_ref[...], dn,
                                preferred_element_type=jnp.float32) + b3_ref[...]
        return (jnp.tanh(y) * scale).astype(o_ref.dtype)

    if n_chunks == 1:
        o_ref[...] = compute(x_ref[...])
    else:
        def body(c, carry):
            r0 = pl.multiple_of(c * chunk, chunk)
            o_ref[pl.ds(r0, chunk), :] = compute(x_ref[pl.ds(r0, chunk), :])
            return carry

        jax.lax.fori_loop(0, n_chunks, body, 0)


def mlp_actor_forward(x, params, act_limit, *, block_b=2048,
                      out_dtype=jnp.float32):
    """x: (B, input_dim) f32 (row-major, used as-is).  params: PyTorch-layout
    weights (out_features, in_features) and biases (1, out_features).
    act_limit: scalar (ideally a device array, reused across calls).
    Returns (B, out_dim) in out_dtype."""
    B, in_dim = x.shape
    h1 = params["w1"].shape[0]
    h2 = params["w2"].shape[0]
    out_dim = params["w3"].shape[0]

    # Batch tile selection: big tiles amortize the ~0.35us/grid-step overhead;
    # cap so v7x's 2 TensorCores each get >= 2 blocks on large batches.
    block_b = max(_CHUNK, _round_up(block_b, _CHUNK))
    if B <= _CHUNK:
        tb = _round_up(max(B, 1), 8)
        chunk = tb
    else:
        tb = min(block_b, _round_up(B, _CHUNK))
        if B >= 4 * _CHUNK:
            tb = min(tb, _round_up(_cdiv(B, 4), _CHUNK))
        tb = max(tb, _CHUNK)
        chunk = _CHUNK
    n_blocks = _cdiv(B, tb)
    n_chunks = tb // chunk

    al = jnp.asarray(act_limit, dtype=jnp.float32).reshape((1,))

    # Weights/biases: full block, constant index_map -> stay VMEM-resident.
    resident = lambda a: pl.BlockSpec(a.shape, lambda i, _al: (0, 0))

    cost = pl.CostEstimate(
        flops=2 * B * (in_dim * h1 + h1 * h2 + h2 * out_dim),
        transcendentals=B * out_dim,
        bytes_accessed=(B * in_dim * x.dtype.itemsize
                        + B * out_dim * jnp.dtype(out_dtype).itemsize
                        + 4 * (in_dim * h1 + h1 * h2 + h2 * out_dim
                               + h1 + h2 + out_dim)),
    )

    kernel = functools.partial(_mlp_actor_kernel, chunk=chunk, n_chunks=n_chunks)

    return pl.pallas_call(
        kernel,
        out_shape=jax.ShapeDtypeStruct((B, out_dim), out_dtype),
        grid_spec=pltpu.PrefetchScalarGridSpec(
            num_scalar_prefetch=1,
            grid=(n_blocks,),
            in_specs=[
                pl.BlockSpec((tb, in_dim), lambda i, _al: (i, 0)),
                resident(params["w1"]), resident(params["b1"]),
                resident(params["w2"]), resident(params["b2"]),
                resident(params["w3"]), resident(params["b3"]),
            ],
            out_specs=pl.BlockSpec((tb, out_dim), lambda i, _al: (i, 0)),
        ),
        compiler_params=pltpu.CompilerParams(
            dimension_semantics=("parallel",)),
        cost_estimate=cost,
    )(al, x, params["w1"], params["b1"], params["w2"], params["b2"],
      params["w3"], params["b3"])


def init_params(key, input_dim, hidden_sizes, out_dim):
    """nn.Linear-style uniform(-1/sqrt(fan_in), +1/sqrt(fan_in)) init.
    Weights in PyTorch layout (out_features, in_features); biases (1, out)."""
    dims = [input_dim] + list(hidden_sizes) + [out_dim]
    params = {}
    keys = jax.random.split(key, 2 * (len(dims) - 1))
    for i in range(len(dims) - 1):
        fan_in, fan_out = dims[i], dims[i + 1]
        bound = float(fan_in) ** -0.5
        params[f"w{i + 1}"] = jax.random.uniform(
            keys[2 * i], (fan_out, fan_in), minval=-bound, maxval=bound,
            dtype=jnp.float32)
        params[f"b{i + 1}"] = jax.random.uniform(
            keys[2 * i + 1], (1, fan_out), minval=-bound, maxval=bound,
            dtype=jnp.float32)
    return params


def reference_forward(x, params, act_limit):
    """Pure-JAX f32 reference (HIGHEST precision matmuls ~ torch f32)."""
    hp = jax.lax.Precision.HIGHEST
    h = jnp.maximum(jnp.dot(x, params["w1"].T, precision=hp) + params["b1"], 0.0)
    h = jnp.maximum(jnp.dot(h, params["w2"].T, precision=hp) + params["b2"], 0.0)
    y = jnp.dot(h, params["w3"].T, precision=hp) + params["b3"]
    return jnp.tanh(y) * jnp.float32(act_limit)


if __name__ == "__main__":
    hidden_sizes = [32, 32]
    input_dim, out_dim = 16, 8
    ACT_LIMIT = 2.0

    key = jax.random.PRNGKey(0)
    k_params, k1, k2, k3 = jax.random.split(key, 4)
    params = init_params(k_params, input_dim, hidden_sizes, out_dim)

    # act_limit hoisted to a device array once (no per-call host->device copy).
    act_limit_dev = jnp.asarray([ACT_LIMIT], dtype=jnp.float32)

    fwd = jax.jit(mlp_actor_forward, static_argnames=("block_b", "out_dtype"))

    # 1) Tiny batch (single small block; exercises ragged edge-block masking).
    x1 = jax.random.normal(k1, (2, input_dim), dtype=jnp.float32)
    out1 = jax.block_until_ready(fwd(x1, params, act_limit_dev))
    ref1 = reference_forward(x1, params, ACT_LIMIT)
    assert out1.shape == (2, out_dim)
    assert jnp.allclose(out1, ref1, atol=2e-3, rtol=2e-3), "mismatch (batch=2)"

    # 2) Mid batch: single block, multi-chunk inner loop + ragged edge rows.
    x2 = jax.random.normal(k2, (300, input_dim), dtype=jnp.float32)
    out2 = jax.block_until_ready(fwd(x2, params, act_limit_dev))
    ref2 = reference_forward(x2, params, ACT_LIMIT)
    assert out2.shape == (300, out_dim)
    assert jnp.allclose(out2, ref2, atol=2e-3, rtol=2e-3), "mismatch (batch=300)"

    # 3) Larger batch: multi-block parallel grid with a ragged final block.
    x3 = jax.random.normal(k3, (1500, input_dim), dtype=jnp.float32)
    out3 = jax.block_until_ready(fwd(x3, params, act_limit_dev, block_b=256))
    ref3 = reference_forward(x3, params, ACT_LIMIT)
    assert out3.shape == (1500, out_dim)
    assert jnp.allclose(out3, ref3, atol=2e-3, rtol=2e-3), "mismatch (batch=1500)"

    # TODO(synk): Model.genotype() (flat parameter export/import) is host-side
    # parameter plumbing, not part of the forward pass; not implemented as a kernel.
    print("KERNEL_OK")
</pallas_src>

<mosaic_0001>
module attributes {stable_mosaic.version = 11 : i64} {
  func.func @_mlp_actor_kernel(%arg0: i32, %arg1: memref<1xf32, #tpu.memory_space<smem>>, %arg2: memref<8x16xf32, #tpu.memory_space<vmem>>, %arg3: memref<32x16xf32, #tpu.memory_space<vmem>>, %arg4: memref<1x32xf32, #tpu.memory_space<vmem>>, %arg5: memref<32x32xf32, #tpu.memory_space<vmem>>, %arg6: memref<1x32xf32, #tpu.memory_space<vmem>>, %arg7: memref<8x32xf32, #tpu.memory_space<vmem>>, %arg8: memref<1x8xf32, #tpu.memory_space<vmem>>, %arg9: memref<8x8xf32, #tpu.memory_space<vmem>>) attributes {dimension_semantics = [#tpu.dimension_semantics<parallel>], iteration_bounds = array<i64: 1>, scalar_prefetch = 1 : i64, scratch_operands = 0 : i64, tpu.core_type = #tpu.core_type<tc>, window_params = [{transform_indices = @transform_0, window_bounds = array<i64: 8, 16>}, {pipeline_mode = #tpu.pipeline_mode<synchronous>, transform_indices = @transform_1, window_bounds = array<i64: 32, 16>}, {pipeline_mode = #tpu.pipeline_mode<synchronous>, transform_indices = @transform_2, window_bounds = array<i64: 1, 32>}, {pipeline_mode = #tpu.pipeline_mode<synchronous>, transform_indices = @transform_3, window_bounds = array<i64: 32, 32>}, {pipeline_mode = #tpu.pipeline_mode<synchronous>, transform_indices = @transform_4, window_bounds = array<i64: 1, 32>}, {pipeline_mode = #tpu.pipeline_mode<synchronous>, transform_indices = @transform_5, window_bounds = array<i64: 8, 32>}, {pipeline_mode = #tpu.pipeline_mode<synchronous>, transform_indices = @transform_6, window_bounds = array<i64: 1, 8>}, {transform_indices = @transform_7, window_bounds = array<i64: 8, 8>}]} {
    %c0 = arith.constant 0 : index
    %0 = memref.load %arg1[%c0] : memref<1xf32, #tpu.memory_space<smem>>
    %c0_0 = arith.constant 0 : index
    %c0_1 = arith.constant 0 : index
    %1 = vector.load %arg2[%c0_0, %c0_1] : memref<8x16xf32, #tpu.memory_space<vmem>>, vector<8x16xf32>
    %c0_2 = arith.constant 0 : index
    %c0_3 = arith.constant 0 : index
    %2 = vector.load %arg3[%c0_2, %c0_3] : memref<32x16xf32, #tpu.memory_space<vmem>>, vector<32x16xf32>
    %cst = arith.constant dense<0.000000e+00> : vector<8x32xf32>
    %3 = tpu.matmul %1, %2, %cst {dimension_numbers = #tpu.dot_dimension_numbers<[1], [1], [0], [0], [0, 0, 1, 0], [], []>} : vector<8x16xf32>, vector<32x16xf32>, vector<8x32xf32> -> vector<8x32xf32>
    %c0_4 = arith.constant 0 : index
    %c0_5 = arith.constant 0 : index
    %4 = vector.load %arg4[%c0_4, %c0_5] : memref<1x32xf32, #tpu.memory_space<vmem>>, vector<1x32xf32>
    %5 = vector.broadcast %4 : vector<1x32xf32> to vector<8x32xf32>
    %6 = arith.addf %3, %5 : vector<8x32xf32>
    %cst_6 = arith.constant 0.000000e+00 : f32
    %7 = vector.broadcast %cst_6 : f32 to vector<8x32xf32>
    %8 = arith.maximumf %6, %7 : vector<8x32xf32>
    %c0_7 = arith.constant 0 : index
    %c0_8 = arith.constant 0 : index
    %9 = vector.load %arg5[%c0_7, %c0_8] : memref<32x32xf32, #tpu.memory_space<vmem>>, vector<32x32xf32>
    %cst_9 = arith.constant dense<0.000000e+00> : vector<8x32xf32>
    %10 = tpu.matmul %8, %9, %cst_9 {dimension_numbers = #tpu.dot_dimension_numbers<[1], [1], [0], [0], [0, 0, 1, 0], [], []>} : vector<8x32xf32>, vector<32x32xf32>, vector<8x32xf32> -> vector<8x32xf32>
    %c0_10 = arith.constant 0 : index
    %c0_11 = arith.constant 0 : index
    %11 = vector.load %arg6[%c0_10, %c0_11] : memref<1x32xf32, #tpu.memory_space<vmem>>, vector<1x32xf32>
    %12 = vector.broadcast %11 : vector<1x32xf32> to vector<8x32xf32>
    %13 = arith.addf %10, %12 : vector<8x32xf32>
    %cst_12 = arith.constant 0.000000e+00 : f32
    %14 = vector.broadcast %cst_12 : f32 to vector<8x32xf32>
    %15 = arith.maximumf %13, %14 : vector<8x32xf32>
    %c0_13 = arith.constant 0 : index
    %c0_14 = arith.constant 0 : index
    %16 = vector.load %arg7[%c0_13, %c0_14] : memref<8x32xf32, #tpu.memory_space<vmem>>, vector<8x32xf32>
    %cst_15 = arith.constant dense<0.000000e+00> : vector<8x8xf32>
    %17 = tpu.matmul %15, %16, %cst_15 {dimension_numbers = #tpu.dot_dimension_numbers<[1], [1], [0], [0], [0, 0, 1, 0], [], []>} : vector<8x32xf32>, vector<8x32xf32>, vector<8x8xf32> -> vector<8x8xf32>
    %c0_16 = arith.constant 0 : index
    %c0_17 = arith.constant 0 : index
    %18 = vector.load %arg8[%c0_16, %c0_17] : memref<1x8xf32, #tpu.memory_space<vmem>>, vector<1x8xf32>
    %19 = vector.broadcast %18 : vector<1x8xf32> to vector<8x8xf32>
    %20 = arith.addf %17, %19 : vector<8x8xf32>
    %21 = math.tanh %20 : vector<8x8xf32>
    %22 = vector.broadcast %0 : f32 to vector<8x8xf32>
    %23 = arith.mulf %21, %22 : vector<8x8xf32>
    %c0_18 = arith.constant 0 : index
    %c0_19 = arith.constant 0 : index
    %24 = vector.load %arg9[%c0_18, %c0_19] : memref<8x8xf32, #tpu.memory_space<vmem>>, vector<8x8xf32>
    tpu.vector_store %arg9[%c0_18, %c0_19], %23 {strides = array<i32>} : memref<8x8xf32, #tpu.memory_space<vmem>>, vector<8x8xf32>,
    return
  }
  func.func @transform_0(%arg0: i32, %arg1: memref<1xf32, #tpu.memory_space<smem>>) -> (i32, i32) {
    %c0_i32 = arith.constant 0 : i32
    %c0_i32_0 = arith.constant 0 : i32
    return %arg0, %c0_i32 : i32, i32
  }
  func.func @transform_1(%arg0: i32, %arg1: memref<1xf32, #tpu.memory_space<smem>>) -> (i32, i32) {
    %c0_i32 = arith.constant 0 : i32
    %c0_i32_0 = arith.constant 0 : i32
    %c0_i32_1 = arith.constant 0 : i32
    return %c0_i32, %c0_i32_0 : i32, i32
  }
  func.func @transform_2(%arg0: i32, %arg1: memref<1xf32, #tpu.memory_space<smem>>) -> (i32, i32) {
    %c0_i32 = arith.constant 0 : i32
    %c0_i32_0 = arith.constant 0 : i32
    %c0_i32_1 = arith.constant 0 : i32
    return %c0_i32, %c0_i32_0 : i32, i32
  }
  func.func @transform_3(%arg0: i32, %arg1: memref<1xf32, #tpu.memory_space<smem>>) -> (i32, i32) {
    %c0_i32 = arith.constant 0 : i32
    %c0_i32_0 = arith.constant 0 : i32
    %c0_i32_1 = arith.constant 0 : i32
    return %c0_i32, %c0_i32_0 : i32, i32
  }
  func.func @transform_4(%arg0: i32, %arg1: memref<1xf32, #tpu.memory_space<smem>>) -> (i32, i32) {
    %c0_i32 = arith.constant 0 : i32
    %c0_i32_0 = arith.constant 0 : i32
    %c0_i32_1 = arith.constant 0 : i32
    return %c0_i32, %c0_i32_0 : i32, i32
  }
  func.func @transform_5(%arg0: i32, %arg1: memref<1xf32, #tpu.memory_space<smem>>) -> (i32, i32) {
    %c0_i32 = arith.constant 0 : i32
    %c0_i32_0 = arith.constant 0 : i32
    %c0_i32_1 = arith.constant 0 : i32
    return %c0_i32, %c0_i32_0 : i32, i32
  }
  func.func @transform_6(%arg0: i32, %arg1: memref<1xf32, #tpu.memory_space<smem>>) -> (i32, i32) {
    %c0_i32 = arith.constant 0 : i32
    %c0_i32_0 = arith.constant 0 : i32
    %c0_i32_1 = arith.constant 0 : i32
    return %c0_i32, %c0_i32_0 : i32, i32
  }
  func.func @transform_7(%arg0: i32, %arg1: memref<1xf32, #tpu.memory_space<smem>>) -> (i32, i32) {
    %c0_i32 = arith.constant 0 : i32
    %c0_i32_0 = arith.constant 0 : i32
    return %arg0, %c0_i32 : i32, i32
  }
}

</mosaic_0001>

<bundles_post_ra>
// kernel: mlp_actor_forward.1
= control target key start
LH: loop header
LB: loop body
LE: loop exit
PB: predicated region body
PF: predicated region fallthrough
CT: control target
= control target key end

     0   :  { %14 = vsyncpa [#allocation5], 0  ;;  %vm42_vm0 = vcmask 130048   ;;  %v415_v1 = vmov 0.0   ;;  %vm140_vm1 = vcmask 261120   ;;  %vm416_vm2 = vmmov 0   ;;  %s525_s0 = inlined_call_operand.<no memory space> [shape: f32[1], index: 0, kind: input, shape index: {}]   ;;  %s526_s1 = inlined_call_operand.vmem [shape: f32[2,16], index: 1, kind: input, shape index: {}]   ;;  %s527_s2 = inlined_call_operand.vmem [shape: f32[32,16], index: 2, kind: input, shape index: {}]   ;;  %s528_s3 = inlined_call_operand.vmem [shape: f32[1,32], index: 3, kind: input, shape index: {}]   ;;  %s529_s4 = inlined_call_operand.vmem [shape: f32[32,32], index: 4, kind: input, shape index: {}]   ;;  %s530_s5 = inlined_call_operand.vmem [shape: f32[1,32], index: 5, kind: input, shape index: {}]   ;;  %s531_s6 = inlined_call_operand.vmem [shape: f32[8,32], index: 6, kind: input, shape index: {}]   ;;  %s532_s7 = inlined_call_operand.vmem [shape: f32[1,8], index: 7, kind: input, shape index: {}]   ;;  %s533_s8 = inlined_call_operand.hbm [shape: f32[2,8], index: 8, kind: output, shape index: {}]  }
   0x1   :  { %v34_v0 = vld [vmem:[%s527_s2 + $0x18] sm:$0xff]  ;;  %359 = vmatprep.subr.mxu0 %v415_v1  ;;  %370 = vmatprep.subr.mxu1 %v415_v1  ;;  %v33_v3 = vld [vmem:[%s527_s2 + $0x10] sm:$0xff]  ;;  %v32_v5 = vld [vmem:[%s527_s2 + $0x8] sm:$0xff]  ;;  %v312_v25 = vstv %s525_s0  ;;  %vm314_vm3 = vcmask 64512  }
   0x2   :  { %360 = vmatpush3.xpose.msk.msra.mxu0 %vm42_vm0, %v34_v0  ;;  %367 = vmatprep.mubr.msk.f32.mxu0 %vm416_vm2, %v415_v1  ;;  %v132_v2 = vld [vmem:[%s529_s4 + $0x18] sm:$0xff]  ;;  %v131_v4 = vld [vmem:[%s529_s4 + $0x10] sm:$0xff]  ;;  %v130_v6 = vld [vmem:[%s529_s4 + $0x8] sm:$0xff] }
   0x3   :  { %361 = vmatprep.subr.mxu0 %v415_v1  ;;  %371 = vmatpush3.xpose.msk.msra.mxu1 %vm140_vm1, %v132_v2  ;;  %v31_v7 = vld [vmem:[%s527_s2] sm:$0xff] }
   0x4   :  { %372 = vmatprep.subr.mxu1 %v415_v1  ;;  %378 = vmatprep.mubr.msk.f32.mxu1 %vm416_vm2, %v415_v1  ;;  %v30_v8 = vld [vmem:[%s526_s1] sm:$0xff] }
   0x5   :  { %v129_v9 = vld [vmem:[%s529_s4] sm:$0xff] }
   0x6   :  { %362 = vmatpush3.xpose.msk.msra.mxu0 %vm42_vm0, %v33_v3  ;;  %v332_v10 = vld [vmem:[%s528_s3] ss:$0 sm:$0xff] }
   0x7   :  { %363 = vmatprep.subr.mxu0 %v415_v1  ;;  %373 = vmatpush3.xpose.msk.msra.mxu1 %vm140_vm1, %v131_v4  ;;  %v227_v15 = vld [vmem:[%s531_s6] sm:$0xff] }
   0x8   :  { %374 = vmatprep.subr.mxu1 %v415_v1  ;;  %v338_v16 = vld [vmem:[%s530_s5] ss:$0 sm:$0xff] }
   0x9   :  { %v344_v21 = vld [vmem:[%s532_s7] ss:$0 sm:$0xff] }
   0xa   :  { %364 = vmatpush3.xpose.msk.msra.mxu0 %vm42_vm0, %v32_v5 }
   0xb   :  { %365 = vmatprep.subr.mxu0 %v415_v1  ;;  %375 = vmatpush3.xpose.msk.msra.mxu1 %vm140_vm1, %v130_v6 }
   0xc   :  { %376 = vmatprep.subr.mxu1 %v415_v1 }
   0xe   :  { %366 = vmatpush3.xpose.msk.msra.mxu0 %vm42_vm0, %v31_v7 }
   0xf   :  { %381 = vmatprep.subr.mxu0 %v415_v1  ;;  %377 = vmatpush3.xpose.msk.msra.mxu1 %vm140_vm1, %v129_v9 }
  0x11   :  { %368 = vmatmul.mubr.msk.f32.vlgmr.msra.gmra.mxu0 %vm42_vm0, %v30_v8 }
  0x12   :  { %383 = vmatprep.mubr.msk.f32.mxu0 %vm416_vm2, %v415_v1  ;;  %382 = vmatpush3.xpose.msk.msra.mxu0 %vm140_vm1, %v227_v15 }
  0xd1   :  { %v124_v11 = vpop.f32.mrf.mxu0 }
  0xd2   :  { %v125_v12 = vadd.f32 %v332_v10, %v124_v11 }
  0xd3   :  { %v369_v13 = vpop.f32.mrf.mxu0 }
  0xd4   :  { %v128_v14 = vmax.f32 %v125_v12, 0.0 }
  0xd6   :  { %379 = vmatmul.mubr.msk.f32.vlgmr.msra.gmra.mxu1 %vm140_vm1, %v128_v14 }
 0x196   :  { %v222_v17 = vpop.f32.mrf.mxu1 }
 0x197   :  { %v223_v18 = vadd.f32 %v338_v16, %v222_v17 }
 0x198   :  { %v380_v19 = vpop.f32.mrf.mxu1 }
 0x199   :  { %v226_v20 = vmax.f32 %v223_v18, 0.0 }
 0x19b   :  { %384 = vmatmul.mubr.msk.f32.vlgmr.msra.gmra.mxu0 %vm140_vm1, %v226_v20 }
 0x25b   :  { %v307_v22 = vpop.f32.mrf.mxu0 }
 0x25c   :  { %v308_v23 = vadd.f32 %v344_v21, %v307_v22 }
 0x25d   :  { %v385_v24 = vpop.f32.mrf.mxu0 }
 0x25e   :  { %391 = vtanh.f32 %v308_v23 }
 0x26b   :  { %v392_v26 = vpop.eup %391 }
 0x26c   :  { %v313_v27 = vmul.f32 %v392_v26, %v312_v25 }
 0x26e   :  { %315 = vst.msk [vmem:[#allocation4] sm:$0xff] %vm314_vm3, %v313_v27 }
 0x26f   :  { %320 = vsyncadd [#allocation5], 96  ;;  %s417_s5 = smov [#allocation4]  }
 0x270   :  { %s321_s28 = sshll.u32 %s417_s5, 4  ;;  %s322_s28 = int_to_ptr.vmem [resolvable:$true] %s321_s28 }
 0x271   :  { %s393_s29 = scalar_lea.vmem %s322_s28, 32  ;;  %s397_s30 = scalar_lea.vmem %s322_s28, 128 }
 0x272   :  { %p394_p0 = scmp.ne.s32.totalorder %s322_s28, %s393_s29  ;;  %p398_p1 = scmp.lt.s32.totalorder %s322_s28, %s322_s28 }
 0x273   :  { %p399_p2 = scmp.lt.s32.totalorder %s397_s30, %s393_s29 }
 0x275   :  { %p400_p3 = por %p399_p2, %p398_p1 }
 0x277   :  { %p401_p4 = pnand %p400_p3, %p394_p0 }
 0x279   :  { %404 = shalt.err (!%p401_p4)
}
 0x27a   :  { %s418_s7 = smov 32   ;;  %s419_s9 = smov 2  }
 0x27b   :  { %327 = dma.vmem_to_hbm [thread:$0]  %s322_s28, 32, %s533_s8, [#allocation5], %s418_s7, %s418_s7, %s419_s9  }
 0x27c   :  { %413 = dma.done.wait [#allocation5], 128  }
 0x27d   :  { %414 = vsyncadd [#allocation5], 4294967168 }
 0x27e   :  { %331 = vsyncpa [#allocation5], 1 }

</bundles_post_ra>
